<compile_context>
chip_gen: v6e
topology: v6e:2x2x1
jax: 0.10.0
libtpu: 0.0.40
codegen_flags: <defaults>
</compile_context>

<pallas_src>
import jax
import jax.numpy as jnp
from jax.experimental import pallas as pl
from jax.experimental.pallas import tpu as pltpu


def _round_up(x: int, m: int) -> int:
    return ((x + m - 1) // m) * m


def _mask_net_kernel(x_ref, w_ref, b_ref, o_ref):
    # Elementwise hot path:  W * (b - x)  ==  -W * (x - b).
    # Upcast once per tile (free for f32, explicit f32 math for bf16 on v5e).
    x = x_ref[...].astype(jnp.float32)   # (tb, td)
    w = w_ref[...].astype(jnp.float32)   # (1,  td) -> broadcast over batch
    b = b_ref[...].astype(jnp.float32)   # (1,  td)
    o_ref[...] = (w * (b - x)).astype(o_ref.dtype)


def nn_mask_net_forward(x, W, b, *, block_batch=None, block_d=None,
                        target_tile_bytes=2 << 20):
    """Pallas implementation of NNMaskNet.forward.

    Args:
      x: (batch, input_dim) array.
      W: (1, input_dim) parameter.
      b: (1, input_dim) parameter.
      block_batch: optional batch tile size (rounded up to the sublane multiple).
      block_d: optional feature tile size (rounded up to a multiple of 128).
      target_tile_bytes: target per-tile footprint used to auto-pick block_batch.

    Returns:
      (batch, input_dim) array, same dtype as x.
    """
    B, D = x.shape
    assert W.shape == (1, D) and b.shape == (1, D)
    out_dtype = x.dtype
    itemsize = jnp.dtype(out_dtype).itemsize
    # Sublane packing multiple: 8 for f32, 16 for bf16, 32 for int8.
    sub = 8 * (4 // itemsize)

    # --- Feature tiling: lane-dense (multiple of 128), capped so a single tile
    # never blows the VMEM budget for very wide D (fits v7x's 64 MiB VMEM).
    d_lane = _round_up(D, 128)
    if block_d is None:
        block_d = min(d_lane, 2048)
    block_d = _round_up(block_d, 128)
    D_pad = _round_up(D, block_d)

    # --- Batch tiling: aim for ~target_tile_bytes per x-tile (and out-tile).
    # With double-buffering, live VMEM ~= 2*(x_tile + out_tile) + W + b, so a
    # 2 MiB tile keeps us around ~8 MiB -- safe on v5e/v6e/v7x scoped limits,
    # while still giving >=85% of HBM roofline per the tiled-elementwise data.
    if block_batch is None:
        bb = max(target_tile_bytes // (block_d * itemsize), sub)
        bb = (bb // sub) * sub
        block_batch = min(bb, _round_up(B, sub))
    block_batch = max(_round_up(block_batch, sub), sub)
    B_pad = _round_up(B, block_batch)

    # Zero-pad to aligned shapes (padded W/b are zero, so the padded region's
    # math is harmless); result is sliced back to (B, D) at the end.
    if (B_pad, D_pad) != (B, D):
        x = jnp.pad(x, ((0, B_pad - B), (0, D_pad - D)))
        W = jnp.pad(W, ((0, 0), (0, D_pad - D)))
        b = jnp.pad(b, ((0, 0), (0, D_pad - D)))

    grid = (B_pad // block_batch, D_pad // block_d)

    cost = pl.CostEstimate(
        flops=2 * B_pad * D_pad,
        transcendentals=0,
        bytes_accessed=(2 * B_pad * D_pad + 2 * D_pad) * itemsize,
    )

    out = pl.pallas_call(
        _mask_net_kernel,
        out_shape=jax.ShapeDtypeStruct((B_pad, D_pad), out_dtype),
        grid_spec=pltpu.PrefetchScalarGridSpec(
            num_scalar_prefetch=0,
            grid=grid,
            in_specs=[
                pl.BlockSpec((block_batch, block_d), lambda i, j: (i, j)),  # x
                pl.BlockSpec((1, block_d), lambda i, j: (0, j)),            # W
                pl.BlockSpec((1, block_d), lambda i, j: (0, j)),            # b
            ],
            out_specs=pl.BlockSpec((block_batch, block_d), lambda i, j: (i, j)),
        ),
        compiler_params=pltpu.CompilerParams(
            # Independent output tiles on both axes -> megacore sharding on v7x.
            dimension_semantics=("parallel", "parallel"),
            # Explicit, conservative scoped-VMEM ceiling valid on all gens.
            vmem_limit_bytes=32 << 20,
        ),
        cost_estimate=cost,
    )(x, W, b)

    if (B_pad, D_pad) != (B, D):
        out = out[:B, :D]
    return out


if __name__ == "__main__":
    key = jax.random.PRNGKey(0)
    kx, kw, kb, kx2 = jax.random.split(key, 4)

    # Small shapes consistent with the module: x is (batch, input_dim).
    batch, input_dim = 8, 32
    x = jax.random.normal(kx, (batch, input_dim), dtype=jnp.float32)
    # NOTE: torch init is zeros; use nonzero values so the math path is exercised.
    W = jax.random.normal(kw, (1, input_dim), dtype=jnp.float32) * 0.1
    b = jax.random.normal(kb, (1, input_dim), dtype=jnp.float32) * 0.1

    out = jax.block_until_ready(nn_mask_net_forward(x, W, b))
    ref = -W * (x - b)
    assert out.shape == (batch, input_dim)
    assert jnp.allclose(out, ref, atol=1e-6, rtol=1e-6), "mismatch vs reference"

    # Ragged / multi-tile path: exercises batch + feature padding and a
    # multi-step (3, 3) grid so v7x megacore sharding actually kicks in.
    batch2, input_dim2 = 37, 300
    x2 = jax.random.normal(kx2, (batch2, input_dim2), dtype=jnp.float32)
    W2 = jax.random.normal(kw, (1, input_dim2), dtype=jnp.float32) * 0.1
    b2 = jax.random.normal(kb, (1, input_dim2), dtype=jnp.float32) * 0.1
    out2 = jax.block_until_ready(
        nn_mask_net_forward(x2, W2, b2, block_batch=16, block_d=128))
    ref2 = -W2 * (x2 - b2)
    assert out2.shape == (batch2, input_dim2)
    assert jnp.allclose(out2, ref2, atol=1e-6, rtol=1e-6), "mismatch vs reference (tiled)"

    print("KERNEL_OK")
</pallas_src>

<mosaic_0001>
module attributes {stable_mosaic.version = 11 : i64} {
  func.func @_mask_net_kernel(%arg0: i32, %arg1: i32, %arg2: memref<8x128xf32, #tpu.memory_space<vmem>>, %arg3: memref<1x128xf32, #tpu.memory_space<vmem>>, %arg4: memref<1x128xf32, #tpu.memory_space<vmem>>, %arg5: memref<8x128xf32, #tpu.memory_space<vmem>>) attributes {dimension_semantics = [#tpu.dimension_semantics<parallel>, #tpu.dimension_semantics<parallel>], iteration_bounds = array<i64: 1, 1>, scalar_prefetch = 0 : i64, scratch_operands = 0 : i64, tpu.core_type = #tpu.core_type<tc>, window_params = [{transform_indices = @transform_0, window_bounds = array<i64: 8, 128>}, {transform_indices = @transform_1, window_bounds = array<i64: 1, 128>}, {transform_indices = @transform_2, window_bounds = array<i64: 1, 128>}, {transform_indices = @transform_3, window_bounds = array<i64: 8, 128>}]} {
    %c0 = arith.constant 0 : index
    %c0_0 = arith.constant 0 : index
    %0 = vector.load %arg2[%c0, %c0_0] : memref<8x128xf32, #tpu.memory_space<vmem>>, vector<8x128xf32>
    %c0_1 = arith.constant 0 : index
    %c0_2 = arith.constant 0 : index
    %1 = vector.load %arg3[%c0_1, %c0_2] : memref<1x128xf32, #tpu.memory_space<vmem>>, vector<1x128xf32>
    %c0_3 = arith.constant 0 : index
    %c0_4 = arith.constant 0 : index
    %2 = vector.load %arg4[%c0_3, %c0_4] : memref<1x128xf32, #tpu.memory_space<vmem>>, vector<1x128xf32>
    %3 = vector.broadcast %2 : vector<1x128xf32> to vector<8x128xf32>
    %4 = arith.subf %3, %0 : vector<8x128xf32>
    %5 = vector.broadcast %1 : vector<1x128xf32> to vector<8x128xf32>
    %6 = arith.mulf %5, %4 : vector<8x128xf32>
    %c0_5 = arith.constant 0 : index
    %c0_6 = arith.constant 0 : index
    %7 = vector.load %arg5[%c0_5, %c0_6] : memref<8x128xf32, #tpu.memory_space<vmem>>, vector<8x128xf32>
    tpu.vector_store %arg5[%c0_5, %c0_6], %6 {strides = array<i32>} : memref<8x128xf32, #tpu.memory_space<vmem>>, vector<8x128xf32>,
    return
  }
  func.func @transform_0(%arg0: i32, %arg1: i32) -> (i32, i32) {
    %c0_i32 = arith.constant 0 : i32
    return %arg0, %arg1 : i32, i32
  }
  func.func @transform_1(%arg0: i32, %arg1: i32) -> (i32, i32) {
    %c0_i32 = arith.constant 0 : i32
    %c0_i32_0 = arith.constant 0 : i32
    return %c0_i32, %arg1 : i32, i32
  }
  func.func @transform_2(%arg0: i32, %arg1: i32) -> (i32, i32) {
    %c0_i32 = arith.constant 0 : i32
    %c0_i32_0 = arith.constant 0 : i32
    return %c0_i32, %arg1 : i32, i32
  }
  func.func @transform_3(%arg0: i32, %arg1: i32) -> (i32, i32) {
    %c0_i32 = arith.constant 0 : i32
    return %arg0, %arg1 : i32, i32
  }
}

</mosaic_0001>

<bundles_post_ra>
// kernel: tpu_custom_call.1
= control target key start
LH: loop header
LB: loop body
LE: loop exit
PB: predicated region body
PF: predicated region fallthrough
CT: control target
= control target key end

     0   :  { %8 = vsyncpa [#allocation3], 0  ;;  %s142_s0 = inlined_call_operand.hbm [shape: f32[8,128], index: 0, kind: input, shape index: {}]   ;;  %s143_s1 = inlined_call_operand.vmem [shape: f32[1,128], index: 1, kind: input, shape index: {}]   ;;  %s144_s2 = inlined_call_operand.vmem [shape: f32[1,128], index: 2, kind: input, shape index: {}]   ;;  %s145_s3 = inlined_call_operand.hbm [shape: f32[8,128], index: 3, kind: output, shape index: {}]  }
   0x1   :  { %9 = vsyncpa [#allocation4], 0  ;;  %s108_s12 = smov [#allocation2]  }
   0x2   :  { %s16_s13 = sshll.u32 %s108_s12, 4  ;;  %s17_s13 = int_to_ptr.vmem [resolvable:$true] %s16_s13 }
   0x3   :  { %s72_s14 = scalar_lea.vmem %s17_s13, 128  ;;  %p77_p1 = scmp.lt.s32.totalorder %s17_s13, %s17_s13 }
   0x4   :  { %p73_p0 = scmp.ne.s32.totalorder %s17_s13, %s72_s14  ;;  %p78_p2 = scmp.lt.s32.totalorder %s72_s14, %s72_s14 }
   0x6   :  { %p79_p3 = por %p78_p2, %p77_p1 }
   0x8   :  { %p80_p4 = pnand %p79_p3, %p73_p0 }
   0xa   :  { %83 = shalt.err (!%p80_p4)
}
   0xb   :  { %19 = dma.hbm_to_vmem [thread:$0]  %s142_s0, 128, %s17_s13, [#allocation3]  }
   0xc   :  { %104 = dma.done.wait [#allocation3], 128  }
   0xd   :  { %105 = vsyncadd [#allocation3], 4294967168  ;;  %v27_v0 = vld [vmem:[#allocation2] sm:$0xff]  ;;  %s109_s21 = smov [#allocation5]  }
   0xe   :  { %v61_v1 = vld [vmem:[%s143_s1] ss:$0 sm:$0xff]  ;;  %s51_s22 = sshll.u32 %s109_s21, 4  ;;  %s52_s22 = int_to_ptr.vmem [resolvable:$true] %s51_s22 }
   0xf   :  { %v60_v2 = vld [vmem:[%s144_s2] ss:$0 sm:$0xff]  ;;  %s84_s23 = scalar_lea.vmem %s52_s22, 128  ;;  %p89_p6 = scmp.lt.s32.totalorder %s52_s22, %s52_s22 }
  0x10   :  { %v36_v3 = vsub.f32 %v60_v2, %v27_v0  ;;  %p85_p5 = scmp.ne.s32.totalorder %s52_s22, %s84_s23  ;;  %p90_p7 = scmp.lt.s32.totalorder %s84_s23, %s84_s23 }
  0x12   :  { %v43_v4 = vmul.f32 %v61_v1, %v36_v3  ;;  %p91_p8 = por %p90_p7, %p89_p6 }
  0x14   :  { %44 = vst [vmem:[#allocation5] sm:$0xff] %v43_v4  ;;  %p92_p9 = pnand %p91_p8, %p85_p5 }
  0x16   :  { %95 = shalt.err (!%p92_p9)
}
  0x17   :  { %54 = dma.vmem_to_hbm [thread:$0]  %s52_s22, 128, %s145_s3, [#allocation4]  }
  0x18   :  { %106 = dma.done.wait [#allocation4], 128  }
  0x19   :  { %107 = vsyncadd [#allocation4], 4294967168 }
  0x1a   :  { %58 = vsyncpa [#allocation3], 1 }
  0x1b   :  { %59 = vsyncpa [#allocation4], 1 }

</bundles_post_ra>
